<compile_context>
chip_gen: v7x
topology: tpu7x:2x2x1
jax: 0.10.0
libtpu: 0.0.40
codegen_flags: <defaults>
</compile_context>

<pallas_src>
import jax
import jax.numpy as jnp
from jax.experimental import pallas as pl
from jax.experimental.pallas import tpu as pltpu


def t2s_kernel(x_ref, temp_ref, pe_ref, scale_ref, w_ref, b_ref, out_ref):
    # x_ref/temp_ref/out_ref: (C, BR) feature-major slabs (lane-dense, BR = B*T*N)
    # pe_ref:    (C, BR) pre-scaled (temporal+spatial) embedding (parameter constant)
    # scale_ref: (1, BR) per-column scale (diag(adj_t)[t] * trace(adj_s))
    # w_ref:     (2C, C) = weight^T (fused GLU weight); b_ref: (2C, 1) bias column
    d = x_ref[...]                                            # (C, BR)
    x = d * scale_ref[...] + pe_ref[...]                      # sublane-bcast of (1,BR)
    y = jnp.dot(w_ref[...], x, preferred_element_type=jnp.float32) + b_ref[...]
    C = d.shape[0]
    g = y[:C, :] * jax.nn.sigmoid(y[C:, :])                   # GLU: free sublane slices
    out_ref[...] = (g + d + temp_ref[...]).astype(out_ref.dtype)  # residuals


def t2s_make_constants(adj_s, adj_t, temporal_emb, spatial_emb, weight, bias, batch):
    """Parameter-only constants; compute once, reuse every forward call."""
    T = temporal_emb.shape[1]
    N = spatial_emb.shape[2]
    C = temporal_emb.shape[-1]
    R = T * N
    # 'tt,btnc->btnc' == per-t scale by diag(adj_t); 'ss,btnc->btnc' == scale by trace(adj_s).
    scale_t = (jnp.diagonal(adj_t) * jnp.trace(adj_s)).astype(jnp.float32)       # (T,)
    pe = temporal_emb.reshape(T, 1, C) + spatial_emb.reshape(1, N, C)            # (T, N, C)
    pe_cr = (pe * scale_t[:, None, None]).reshape(R, C).T.astype(jnp.float32)    # (C, R)
    pe_full = jnp.tile(pe_cr, (1, batch))                                        # (C, B*R)
    scale_full = jnp.broadcast_to(
        scale_t[None, :, None], (batch, T, N)).reshape(1, batch * R).astype(jnp.float32)
    w_t = weight.T.astype(jnp.float32)                                           # (2C, C)
    b_col = bias.reshape(2 * C, 1).astype(jnp.float32)                           # (2C, 1)
    return pe_full, scale_full, w_t, b_col


@jax.jit
def _t2s_apply(data, temp, pe_full, scale_full, w_t, b_col):
    B, T, N, C = data.shape
    BR = B * T * N

    # Feature-major relayout (32 KB transposes, fused under jit with the call).
    data_t = data.reshape(BR, C).T                   # (C, BR)
    temp_t = temp.reshape(BR, C).T                   # (C, BR)

    cost = pl.CostEstimate(
        flops=2 * (2 * C) * C * BR,
        transcendentals=C * BR,
        bytes_accessed=(3 * C * BR + C * BR + BR + 2 * C * C + 2 * C) * 4,
    )

    out_t = pl.pallas_call(
        t2s_kernel,
        grid=(1,),                                           # single step: latency-bound problem
        in_specs=[
            pl.BlockSpec((C, BR), lambda i: (0, 0)),         # data (feature-major)
            pl.BlockSpec((C, BR), lambda i: (0, 0)),         # temp residual
            pl.BlockSpec((C, BR), lambda i: (0, 0)),         # pre-scaled pos emb
            pl.BlockSpec((1, BR), lambda i: (0, 0)),         # per-column scale row
            pl.BlockSpec((2 * C, C), lambda i: (0, 0)),      # W^T (fused GLU weight)
            pl.BlockSpec((2 * C, 1), lambda i: (0, 0)),      # bias column
        ],
        out_specs=pl.BlockSpec((C, BR), lambda i: (0, 0)),
        out_shape=jax.ShapeDtypeStruct((C, BR), data.dtype),
        input_output_aliases={0: 0},                         # output reuses data slab
        compiler_params=pltpu.CompilerParams(
            dimension_semantics=("arbitrary",)),
        cost_estimate=cost,
    )(data_t, temp_t, pe_full, scale_full, w_t, b_col)

    return out_t.T.reshape(B, T, N, C)


def t2s_forward(data, temp, adj_s, adj_t, temporal_emb, spatial_emb, weight, bias):
    consts = t2s_make_constants(adj_s, adj_t, temporal_emb, spatial_emb,
                                weight, bias, data.shape[0])
    return _t2s_apply(data, temp, *consts)


def t2s_reference(data, temp, adj_s, adj_t, temporal_emb, spatial_emb, weight, bias):
    """Pure-JAX reference mirroring the PyTorch forward exactly."""
    C = data.shape[-1]
    x = data + temporal_emb + spatial_emb
    x = jnp.einsum('tt,btnc->btnc', adj_t, x)
    x = jnp.einsum('ss,btnc->btnc', adj_s, x)
    y = jnp.matmul(x, weight) + bias
    lhs, rhs = y[..., :C], y[..., C:]
    return lhs * jax.nn.sigmoid(rhs) + data + temp


if __name__ == "__main__":
    key = jax.random.PRNGKey(0)
    B, T, N, C = 2, 8, 16, 32
    ks = jax.random.split(key, 8)

    data = jax.random.normal(ks[0], (B, T, N, C), jnp.float32)
    temp = jax.random.normal(ks[1], (B, T, N, C), jnp.float32)
    adj_s = jax.random.normal(ks[2], (N, N), jnp.float32) * 0.1
    adj_t = jax.random.normal(ks[3], (T, T), jnp.float32) * 0.1

    # Deterministic synthetic parameters (shapes match the PyTorch module's __init__;
    # xavier_normal(gain=3e-4) -> small normal, bias -> standard normal).
    temporal_emb = 3e-4 * jax.random.normal(ks[4], (1, T, 1, C), jnp.float32)
    spatial_emb = 3e-4 * jax.random.normal(ks[5], (1, 1, N, C), jnp.float32)
    weight = 3e-4 * jax.random.normal(ks[6], (C, 2 * C), jnp.float32)
    bias = jax.random.normal(ks[7], (1, 2 * C), jnp.float32)

    out = t2s_forward(data, temp, adj_s, adj_t, temporal_emb, spatial_emb, weight, bias)
    out = jax.block_until_ready(out)

    ref = t2s_reference(data, temp, adj_s, adj_t, temporal_emb, spatial_emb, weight, bias)
    assert out.shape == (B, T, N, C)
    assert jnp.allclose(out, ref, atol=1e-5, rtol=1e-5), "Pallas output mismatch vs reference"

    print("KERNEL_OK")
</pallas_src>

<mosaic_0001>
module attributes {stable_mosaic.version = 11 : i64} {
  func.func @t2s_kernel(%arg0: i32, %arg1: memref<32x256xf32, #tpu.memory_space<vmem>>, %arg2: memref<32x256xf32, #tpu.memory_space<vmem>>, %arg3: memref<32x256xf32, #tpu.memory_space<vmem>>, %arg4: memref<1x256xf32, #tpu.memory_space<vmem>>, %arg5: memref<64x32xf32, #tpu.memory_space<vmem>>, %arg6: memref<64x1xf32, #tpu.memory_space<vmem>>, %arg7: memref<32x256xf32, #tpu.memory_space<vmem>>) attributes {dimension_semantics = [#tpu.dimension_semantics<arbitrary>], iteration_bounds = array<i64: 1>, scalar_prefetch = 0 : i64, scratch_operands = 0 : i64, tpu.core_type = #tpu.core_type<tc>, window_params = [{pipeline_mode = #tpu.pipeline_mode<synchronous>, transform_indices = @transform_0, window_bounds = array<i64: 32, 256>}, {pipeline_mode = #tpu.pipeline_mode<synchronous>, transform_indices = @transform_1, window_bounds = array<i64: 32, 256>}, {pipeline_mode = #tpu.pipeline_mode<synchronous>, transform_indices = @transform_2, window_bounds = array<i64: 32, 256>}, {pipeline_mode = #tpu.pipeline_mode<synchronous>, transform_indices = @transform_3, window_bounds = array<i64: 1, 256>}, {pipeline_mode = #tpu.pipeline_mode<synchronous>, transform_indices = @transform_4, window_bounds = array<i64: 64, 32>}, {pipeline_mode = #tpu.pipeline_mode<synchronous>, transform_indices = @transform_5, window_bounds = array<i64: 64, 1>}, {pipeline_mode = #tpu.pipeline_mode<synchronous>, transform_indices = @transform_6, window_bounds = array<i64: 32, 256>}]} {
    %c0 = arith.constant 0 : index
    %c0_0 = arith.constant 0 : index
    %0 = vector.load %arg1[%c0, %c0_0] : memref<32x256xf32, #tpu.memory_space<vmem>>, vector<32x256xf32>
    %c0_1 = arith.constant 0 : index
    %c0_2 = arith.constant 0 : index
    %1 = vector.load %arg4[%c0_1, %c0_2] : memref<1x256xf32, #tpu.memory_space<vmem>>, vector<1x256xf32>
    %2 = vector.broadcast %1 : vector<1x256xf32> to vector<32x256xf32>
    %3 = arith.mulf %0, %2 : vector<32x256xf32>
    %c0_3 = arith.constant 0 : index
    %c0_4 = arith.constant 0 : index
    %4 = vector.load %arg3[%c0_3, %c0_4] : memref<32x256xf32, #tpu.memory_space<vmem>>, vector<32x256xf32>
    %5 = arith.addf %3, %4 : vector<32x256xf32>
    %c0_5 = arith.constant 0 : index
    %c0_6 = arith.constant 0 : index
    %6 = vector.load %arg5[%c0_5, %c0_6] : memref<64x32xf32, #tpu.memory_space<vmem>>, vector<64x32xf32>
    %cst = arith.constant dense<0.000000e+00> : vector<64x256xf32>
    %7 = tpu.matmul %6, %5, %cst {dimension_numbers = #tpu.dot_dimension_numbers<[1], [0], [0], [1], [0, 0, 1, 1], [], []>} : vector<64x32xf32>, vector<32x256xf32>, vector<64x256xf32> -> vector<64x256xf32>
    %c0_7 = arith.constant 0 : index
    %c0_8 = arith.constant 0 : index
    %8 = vector.load %arg6[%c0_7, %c0_8] : memref<64x1xf32, #tpu.memory_space<vmem>>, vector<64x1xf32>
    %9 = vector.broadcast %8 : vector<64x1xf32> to vector<64x256xf32>
    %10 = arith.addf %7, %9 : vector<64x256xf32>
    %11 = vector.extract_strided_slice %10 {offsets = [0, 0], sizes = [32, 256], strides = [1, 1]} : vector<64x256xf32> to vector<32x256xf32>
    %12 = vector.extract_strided_slice %10 {offsets = [32, 0], sizes = [32, 256], strides = [1, 1]} : vector<64x256xf32> to vector<32x256xf32>
    %13 = arith.negf %12 : vector<32x256xf32>
    %14 = math.exp %13 : vector<32x256xf32>
    %cst_9 = arith.constant 1.000000e+00 : f32
    %15 = vector.broadcast %cst_9 : f32 to vector<32x256xf32>
    %16 = arith.addf %15, %14 : vector<32x256xf32>
    %17 = arith.divf %15, %16 : vector<32x256xf32>
    %18 = arith.mulf %11, %17 : vector<32x256xf32>
    %19 = arith.addf %18, %0 : vector<32x256xf32>
    %c0_10 = arith.constant 0 : index
    %c0_11 = arith.constant 0 : index
    %20 = vector.load %arg2[%c0_10, %c0_11] : memref<32x256xf32, #tpu.memory_space<vmem>>, vector<32x256xf32>
    %21 = arith.addf %19, %20 : vector<32x256xf32>
    %c0_12 = arith.constant 0 : index
    %c0_13 = arith.constant 0 : index
    %22 = vector.load %arg7[%c0_12, %c0_13] : memref<32x256xf32, #tpu.memory_space<vmem>>, vector<32x256xf32>
    tpu.vector_store %arg7[%c0_12, %c0_13], %21 {strides = array<i32>} : memref<32x256xf32, #tpu.memory_space<vmem>>, vector<32x256xf32>,
    return
  }
  func.func @transform_0(%arg0: i32) -> (i32, i32) {
    %c0_i32 = arith.constant 0 : i32
    %c0_i32_0 = arith.constant 0 : i32
    %c0_i32_1 = arith.constant 0 : i32
    return %c0_i32, %c0_i32_0 : i32, i32
  }
  func.func @transform_1(%arg0: i32) -> (i32, i32) {
    %c0_i32 = arith.constant 0 : i32
    %c0_i32_0 = arith.constant 0 : i32
    %c0_i32_1 = arith.constant 0 : i32
    return %c0_i32, %c0_i32_0 : i32, i32
  }
  func.func @transform_2(%arg0: i32) -> (i32, i32) {
    %c0_i32 = arith.constant 0 : i32
    %c0_i32_0 = arith.constant 0 : i32
    %c0_i32_1 = arith.constant 0 : i32
    return %c0_i32, %c0_i32_0 : i32, i32
  }
  func.func @transform_3(%arg0: i32) -> (i32, i32) {
    %c0_i32 = arith.constant 0 : i32
    %c0_i32_0 = arith.constant 0 : i32
    %c0_i32_1 = arith.constant 0 : i32
    return %c0_i32, %c0_i32_0 : i32, i32
  }
  func.func @transform_4(%arg0: i32) -> (i32, i32) {
    %c0_i32 = arith.constant 0 : i32
    %c0_i32_0 = arith.constant 0 : i32
    %c0_i32_1 = arith.constant 0 : i32
    return %c0_i32, %c0_i32_0 : i32, i32
  }
  func.func @transform_5(%arg0: i32) -> (i32, i32) {
    %c0_i32 = arith.constant 0 : i32
    %c0_i32_0 = arith.constant 0 : i32
    %c0_i32_1 = arith.constant 0 : i32
    return %c0_i32, %c0_i32_0 : i32, i32
  }
  func.func @transform_6(%arg0: i32) -> (i32, i32) {
    %c0_i32 = arith.constant 0 : i32
    %c0_i32_0 = arith.constant 0 : i32
    %c0_i32_1 = arith.constant 0 : i32
    return %c0_i32, %c0_i32_0 : i32, i32
  }
}

</mosaic_0001>

<bundles_post_ra>
// kernel: _t2s_apply.1
= control target key start
LH: loop header
LB: loop body
LE: loop exit
PB: predicated region body
PF: predicated region fallthrough
CT: control target
= control target key end

     0   :  { %v33_v0 = vlaneseq  ;;  %v417_v1 = vmov 0.0   ;;  %v418_v3 = vmov 0   ;;  %vm123_vm0 = vcmask 261120   ;;  %s667_s3 = inlined_call_operand.vmem [shape: f32[1,256], index: 3, kind: input, shape index: {}]   ;;  %s668_s0 = inlined_call_operand.vmem [shape: f32[32,256], index: 0, kind: input, shape index: {}, may-alias: {0,6}]   ;;  %s669_s2 = inlined_call_operand.vmem [shape: f32[32,256], index: 2, kind: input, shape index: {}]   ;;  %s670_s5 = inlined_call_operand.vmem [shape: f32[64,1], index: 5, kind: input, shape index: {}]   ;;  %s671_s4 = inlined_call_operand.vmem [shape: f32[64,32], index: 4, kind: input, shape index: {}]   ;;  %s672_s1 = inlined_call_operand.vmem [shape: f32[32,256], index: 1, kind: input, shape index: {}]   ;;  %s673_s6 = inlined_call_operand.vmem [shape: f32[32,256], index: 6, kind: output, shape index: {}, may-alias: {0,6}]  }
   0x1   :  { %212 = vmatprep.mubr.f32.mxu0 %v417_v1  ;;  %236 = vmatprep.mubr.f32.mxu1 %v417_v1  ;;  %v31_v4 = vld [vmem:[%s667_s3] sm:$0x3]  ;;  %v462_v5 = vld [vmem:[%s668_s0 + $0x8] sm:$0xff]  ;;  %v467_v6 = vld [vmem:[%s668_s0 + $0x18] sm:$0xff] }
   0x2   :  { %v34_v2 = vshrl.u32 %v33_v0, 7  ;;  %384 = vset.pattern.permute.xlu1 %v418_v3  ;;  %383 = vset.pattern.permute.xlu0 %v418_v3  ;;  %v52_v9 = vld [vmem:[%s669_s2 + $0x8] sm:$0xff]  ;;  %v54_v10 = vld [vmem:[%s669_s2 + $0x18] sm:$0xff]  ;;  %v478_v11 = vld [vmem:[%s668_s0] sm:$0xff] }
   0x3   :  { %v483_v12 = vld [vmem:[%s668_s0 + $0x10] sm:$0xff]  ;;  %v488_v13 = vld [vmem:[%s668_s0 + $0x28] sm:$0xff]  ;;  %v493_v16 = vld [vmem:[%s668_s0 + $0x38] sm:$0xff] }
   0x4   :  { %v39_v7 = vsub.s32 1, %v34_v2  ;;  %v35_v8 = vsub.s32 0, %v34_v2  ;;  %v498_v17 = vld [vmem:[%s668_s0 + $0x20] sm:$0xff]  ;;  %v503_v18 = vld [vmem:[%s668_s0 + $0x30] sm:$0xff]  ;;  %v56_v21 = vld [vmem:[%s669_s2 + $0x28] sm:$0xff] }
   0x5   :  { %v51_v19 = vld [vmem:[%s669_s2] sm:$0xff]  ;;  %v53_v20 = vld [vmem:[%s669_s2 + $0x10] sm:$0xff]  ;;  %v58_v26 = vld [vmem:[%s669_s2 + $0x38] sm:$0xff] }
   0x6   :  { %v40_v14 = vrot.slane %v31_v4, %v39_v7  ;;  %v36_v15 = vrot.slane %v31_v4, %v35_v8  ;;  %v55_v27 = vld [vmem:[%s669_s2 + $0x20] sm:$0xff]  ;;  %v57_v28 = vld [vmem:[%s669_s2 + $0x30] sm:$0xff]  ;;  %v82_v46 = vld [vmem:[%s670_s5 + $0x38] sm:$0xff] }
   0x7   :  { %v81_v33 = vld [vmem:[%s670_s5 + $0x30] sm:$0xff]  ;;  %v79_v34 = vld [vmem:[%s670_s5 + $0x20] sm:$0xff]  ;;  %v80_v47 = vld [vmem:[%s670_s5 + $0x28] sm:$0xff] }
   0x8   :  { %v44_v22 = vmul.f32 %v40_v14, %v462_v5  ;;  %v46_v23 = vmul.f32 %v40_v14, %v467_v6  ;;  %v43_v24 = vmul.f32 %v36_v15, %v478_v11  ;;  %v45_v25 = vmul.f32 %v36_v15, %v483_v12  ;;  %115 = vperm.xlu1 %384, %v81_v33   ;;  %v76_v49 = vld [vmem:[%s670_s5 + $0x8] sm:$0xff]  ;;  %v75_v50 = vld [vmem:[%s670_s5] sm:$0xff]  ;;  %v78_v53 = vld [vmem:[%s670_s5 + $0x18] sm:$0xff] }
   0x9   :  { %v48_v29 = vmul.f32 %v40_v14, %v488_v13  ;;  %v50_v30 = vmul.f32 %v40_v14, %v493_v16  ;;  %v47_v31 = vmul.f32 %v36_v15, %v498_v17  ;;  %v49_v32 = vmul.f32 %v36_v15, %v503_v18  ;;  %105 = vperm.xlu0 %383, %v79_v34   ;;  %v67_v51 = vld [vmem:[%s671_s4] sm:$0xff]  ;;  %v77_v54 = vld [vmem:[%s670_s5 + $0x10] sm:$0xff]  ;;  %v68_v55 = vld [vmem:[%s671_s4 + $0x8] sm:$0xff] }
   0xa   :  { %v60_v35 = vadd.f32 %v52_v9, %v44_v22  ;;  %v62_v36 = vadd.f32 %v54_v10, %v46_v23  ;;  %v59_v37 = vadd.f32 %v51_v19, %v43_v24  ;;  %v61_v38 = vadd.f32 %v53_v20, %v45_v25  ;;  %v71_v52 = vld [vmem:[%s671_s4 + $0x20] sm:$0xff]  ;;  %v72_v56 = vld [vmem:[%s671_s4 + $0x28] sm:$0xff]  ;;  %v69_v57 = vld [vmem:[%s671_s4 + $0x10] sm:$0xff] }
   0xb   :  { %v64_v39 = vadd.f32 %v56_v21, %v48_v29  ;;  %v66_v40 = vadd.f32 %v58_v26, %v50_v30  ;;  %v63_v41 = vadd.f32 %v55_v27, %v47_v31  ;;  %v65_v42 = vadd.f32 %v57_v28, %v49_v32  ;;  %v73_v58 = vld [vmem:[%s671_s4 + $0x30] sm:$0xff]  ;;  %v70_v59 = vld [vmem:[%s671_s4 + $0x18] sm:$0xff] }
   0xc   :  { %v369_v43 = vpack.c.bf16 %v62_v36, %v60_v35  ;;  %v371_v44 = vpack.c.bf16 %v61_v38, %v59_v37  ;;  %120 = vperm.xlu1 %384, %v82_v46   ;;  %v74_v60 = vld [vmem:[%s671_s4 + $0x38] sm:$0xff] }
   0xd   :  { %v373_v45 = vpack.c.bf16 %v66_v40, %v64_v39  ;;  %v375_v48 = vpack.c.bf16 %v65_v42, %v63_v41  ;;  %110 = vperm.xlu0 %383, %v80_v47  }
   0xe   :  { %370 = vmatprep.subr.bf16.mxu0 %v369_v43  ;;  %377 = vmatprep.subr.bf16.mxu1 %v369_v43 }
   0xf   :  { %372 = vmatpush1.bf16.msra.mxu0 %v371_v44  ;;  %379 = vmatpush1.bf16.msra.mxu1 %v371_v44 }
  0x10   :  { %374 = vmatprep.subr.bf16.mxu0 %v373_v45  ;;  %378 = vmatprep.subr.bf16.mxu1 %v373_v45 }
  0x11   :  { %90 = vperm.xlu1 %384, %v76_v49   ;;  %85 = vperm.xlu0 %383, %v75_v50  }
  0x13   :  { %376 = vmatpush1.bf16.msra.mxu0 %v375_v48  ;;  %380 = vmatpush1.bf16.msra.mxu1 %v375_v48 }
  0x15   :  { %100 = vperm.xlu1 %384, %v78_v53   ;;  %95 = vperm.xlu0 %383, %v77_v54  }
  0x16   :  { %353 = vmatmul.mubr.msk.f32.vlgmr.msra.gmra.mrb[0].mxu0 %vm123_vm0, %v67_v51  ;;  %357 = vmatmul.mubr.msk.f32.vlgmr.msra.gmra.mrb[0].mxu1 %vm123_vm0, %v71_v52 }
  0x17   :  { %218 = vmatprep.mubr.f32.mxu0 %v417_v1  ;;  %242 = vmatprep.mubr.f32.mxu1 %v417_v1 }
  0x1a   :  { %354 = vmatmul.mubr.msk.f32.gmra.mrb[2].mxu0 %vm123_vm0, %v68_v55  ;;  %358 = vmatmul.mubr.msk.f32.gmra.mrb[2].mxu1 %vm123_vm0, %v72_v56 }
  0x1b   :  { %224 = vmatprep.mubr.f32.mxu0 %v417_v1  ;;  %248 = vmatprep.mubr.f32.mxu1 %v417_v1 }
  0x1e   :  { %355 = vmatmul.mubr.msk.f32.gmra.mrb[4].mxu0 %vm123_vm0, %v69_v57  ;;  %359 = vmatmul.mubr.msk.f32.gmra.mrb[4].mxu1 %vm123_vm0, %v73_v58 }
  0x1f   :  { %230 = vmatprep.mubr.f32.mxu0 %v417_v1  ;;  %254 = vmatprep.mubr.f32.mxu1 %v417_v1 }
  0x22   :  { %356 = vmatmul.mubr.msk.f32.gmra.mrb[6].mxu0 %vm123_vm0, %v70_v59  ;;  %360 = vmatmul.mubr.msk.f32.gmra.mrb[6].mxu1 %vm123_vm0, %v74_v60 }
  0x87   :  { %v116_v1 = vpop.permute.xlu1 %115 }
  0x88   :  { %v106_v61 = vpop.permute.xlu0 %105 }
  0x8b   :  { %v121_v30 = vpop.permute.xlu1 %120 }
  0x8c   :  { %v111_v8 = vpop.permute.xlu0 %110 }
  0x90   :  { %v86_v53 = vpop.permute.xlu0 %85 }
  0xe9   :  { %v238_v62 = vpop.f32.mrb[0].mxu1  ;;  %v214_v63 = vpop.f32.mrb[0].mxu0 }
  0xea   :  { %v239_v0 = vadd.f32 %v238_v62, %v106_v61  ;;  %v240_v2 = vpop.f32.mrb[1].mxu1  ;;  %v216_v3 = vpop.f32.mrb[1].mxu0  ;;  %v215_v55 = vadd.f32 %v214_v63, %v86_v53  ;;  %v326_v63 = vld [vmem:[%s672_s1 + $0x8] sm:$0xff] }
  0xeb   :  { %v241_v4 = vadd.f32 %v240_v2, %v106_v61  ;;  %v217_v57 = vadd.f32 %v216_v3, %v86_v53  ;;  %v91_v62 = vpop.permute.xlu1 %90 }
  0xec   :  { %v361_v7 = vmul.f32 -1.442695, %v239_v0  ;;  %v325_v0 = vld [vmem:[%s672_s1] sm:$0xff] }
  0xed   :  { %v362_v9 = vmul.f32 -1.442695, %v241_v4  ;;  %v244_v10 = vpop.f32.mrb[2].mxu1  ;;  %v593_v14 = vpop.f32.mrb[2].mxu0 }
  0xee   :  { %385 = vpow2.f32 %v361_v7  ;;  %v245_v15 = vadd.f32 %v244_v10, %v111_v8  ;;  %v246_v19 = vpop.f32.mrb[3].mxu1  ;;  %v595_v20 = vpop.f32.mrb[3].mxu0 }
  0xef   :  { %387 = vpow2.f32 %v362_v9  ;;  %v247_v21 = vadd.f32 %v246_v19, %v111_v8  ;;  %v223_v9 = vadd.f32 %v595_v20, %v91_v62  ;;  %v96_v10 = vpop.permute.xlu0 %95 }
  0xf0   :  { %v363_v22 = vmul.f32 -1.442695, %v245_v15 }
  0xf1   :  { %v364_v23 = vmul.f32 -1.442695, %v247_v21  ;;  %v597_v24 = vpop.f32.mrb[4].mxu0  ;;  %v250_v25 = vpop.f32.mrb[4].mxu1 }
  0xf2   :  { %389 = vpow2.f32 %v363_v22  ;;  %v251_v26 = vadd.f32 %v250_v25, %v116_v1  ;;  %v599_v27 = vpop.f32.mrb[5].mxu0  ;;  %v252_v28 = vpop.f32.mrb[5].mxu1  ;;  %v227_v20 = vadd.f32 %v597_v24, %v96_v10 }
  0xf3   :  { %391 = vpow2.f32 %v364_v23  ;;  %v253_v29 = vadd.f32 %v252_v28, %v116_v1  ;;  %v221_v1 = vadd.f32 %v593_v14, %v91_v62  ;;  %v229_v28 = vadd.f32 %v599_v27, %v96_v10 }
  0xf4   :  { %v365_v31 = vmul.f32 -1.442695, %v251_v26 }
  0xf5   :  { %v366_v32 = vmul.f32 -1.442695, %v253_v29  ;;  %v601_v33 = vpop.f32.mrb[6].mxu0  ;;  %v256_v34 = vpop.f32.mrb[6].mxu1 }
  0xf6   :  { %393 = vpow2.f32 %v365_v31  ;;  %v257_v35 = vadd.f32 %v256_v34, %v121_v30  ;;  %v603_v36 = vpop.f32.mrb[7].mxu0  ;;  %v258_v37 = vpop.f32.mrb[7].mxu1  ;;  %v329_v34 = vld [vmem:[%s672_s1 + $0x20] sm:$0xff] }
  0xf7   :  { %395 = vpow2.f32 %v366_v32  ;;  %v259_v38 = vadd.f32 %v258_v37, %v121_v30 }
  0xf8   :  { %v386_v39 = vpop.eup %385  ;;  %v367_v40 = vmul.f32 -1.442695, %v257_v35 }
  0xf9   :  { %v388_v41 = vpop.eup %387  ;;  %v285_v42 = vadd.f32 1.0, %v386_v39  ;;  %v368_v43 = vmul.f32 -1.442695, %v259_v38 }
  0xfa   :  { %v286_v44 = vadd.f32 1.0, %v388_v41  ;;  %397 = vpow2.f32 %v367_v40 }
  0xfb   :  { %399 = vrcp.f32 %v285_v42 }
  0xfc   :  { %v390_v45 = vpop.eup %389  ;;  %401 = vrcp.f32 %v286_v44 }
  0xfd   :  { %v392_v46 = vpop.eup %391  ;;  %v287_v47 = vadd.f32 1.0, %v390_v45  ;;  %403 = vpow2.f32 %v368_v43  ;;  %v332_v45 = vld [vmem:[%s672_s1 + $0x38] sm:$0xff] }
  0xfe   :  { %v288_v48 = vadd.f32 1.0, %v392_v46 }
  0xff   :  { %405 = vrcp.f32 %v287_v47 }
 0x100   :  { %v394_v49 = vpop.eup %393  ;;  %407 = vrcp.f32 %v288_v48 }
 0x101   :  { %v396_v50 = vpop.eup %395  ;;  %v289_v51 = vadd.f32 1.0, %v394_v49 }
 0x102   :  { %v290_v52 = vadd.f32 1.0, %v396_v50 }
 0x103   :  { %409 = vrcp.f32 %v289_v51 }
 0x104   :  { %v398_v54 = vpop.eup %397  ;;  %411 = vrcp.f32 %v290_v52 }
 0x105   :  { %v400_v56 = vpop.eup %399  ;;  %v291_v58 = vadd.f32 1.0, %v398_v54 }
 0x106   :  { %v402_v59 = vpop.eup %401  ;;  %v309_v60 = vmul.f32 %v400_v56, %v215_v55 }
 0x107   :  { %v404_v61 = vpop.eup %403  ;;  %v310_v2 = vmul.f32 %v402_v59, %v217_v57  ;;  %413 = vrcp.f32 %v291_v58 }
 0x108   :  { %v317_v4 = vadd.f32 %v309_v60, %v478_v11  ;;  %v292_v3 = vadd.f32 1.0, %v404_v61  ;;  %v327_v11 = vld [vmem:[%s672_s1 + $0x10] sm:$0xff] }
 0x109   :  { %v406_v7 = vpop.eup %405  ;;  %v318_v8 = vadd.f32 %v310_v2, %v462_v5  ;;  %v328_v5 = vld [vmem:[%s672_s1 + $0x18] sm:$0xff] }
 0x10a   :  { %v408_v15 = vpop.eup %407  ;;  %v333_v19 = vadd.f32 %v325_v0, %v317_v4  ;;  %v311_v21 = vmul.f32 %v406_v7, %v221_v1  ;;  %415 = vrcp.f32 %v292_v3 }
 0x10b   :  { %v334_v22 = vadd.f32 %v326_v63, %v318_v8  ;;  %v312_v23 = vmul.f32 %v408_v15, %v223_v9 }
 0x10c   :  { %341 = vst [vmem:[%s673_s6] sm:$0xff] %v333_v19  ;;  %v319_v14 = vadd.f32 %v311_v21, %v483_v12  ;;  %v101_v12 = vpop.permute.xlu1 %100 }
 0x10d   :  { %v410_v25 = vpop.eup %409  ;;  %342 = vst [vmem:[%s673_s6 + $0x8] sm:$0xff] %v334_v22  ;;  %v320_v26 = vadd.f32 %v312_v23, %v467_v6  ;;  %v330_v6 = vld [vmem:[%s672_s1 + $0x28] sm:$0xff]  ;;  %v233_v27 = vadd.f32 %v601_v33, %v101_v12  ;;  %v235_v42 = vadd.f32 %v603_v36, %v101_v12 }
 0x10e   :  { %v412_v29 = vpop.eup %411  ;;  %v335_v30 = vadd.f32 %v327_v11, %v319_v14  ;;  %v313_v31 = vmul.f32 %v410_v25, %v227_v20 }
 0x10f   :  { %v336_v32 = vadd.f32 %v328_v5, %v320_v26  ;;  %v314_v35 = vmul.f32 %v412_v29, %v229_v28 }
 0x110   :  { %343 = vst [vmem:[%s673_s6 + $0x10] sm:$0xff] %v335_v30  ;;  %v321_v24 = vadd.f32 %v313_v31, %v498_v17  ;;  %v331_v17 = vld [vmem:[%s672_s1 + $0x30] sm:$0xff] }
 0x111   :  { %v414_v37 = vpop.eup %413  ;;  %344 = vst [vmem:[%s673_s6 + $0x18] sm:$0xff] %v336_v32  ;;  %v322_v38 = vadd.f32 %v314_v35, %v488_v13 }
 0x112   :  { %v337_v39 = vadd.f32 %v329_v34, %v321_v24  ;;  %v315_v40 = vmul.f32 %v414_v37, %v233_v27 }
 0x113   :  { %v338_v41 = vadd.f32 %v330_v6, %v322_v38 }
 0x114   :  { %v416_v43 = vpop.eup %415  ;;  %345 = vst [vmem:[%s673_s6 + $0x20] sm:$0xff] %v337_v39  ;;  %v323_v33 = vadd.f32 %v315_v40, %v503_v18 }
 0x115   :  { %346 = vst [vmem:[%s673_s6 + $0x28] sm:$0xff] %v338_v41  ;;  %v316_v13 = vmul.f32 %v416_v43, %v235_v42 }
 0x116   :  { %v339_v44 = vadd.f32 %v331_v17, %v323_v33 }
 0x117   :  { %v324_v46 = vadd.f32 %v316_v13, %v493_v16 }
 0x118   :  { %347 = vst [vmem:[%s673_s6 + $0x30] sm:$0xff] %v339_v44 }
 0x119   :  { %v340_v36 = vadd.f32 %v332_v45, %v324_v46 }
 0x11b   :  { %348 = vst [vmem:[%s673_s6 + $0x38] sm:$0xff] %v340_v36 }

</bundles_post_ra>
